<compile_context>
chip_gen: v7x
topology: tpu7x:2x2x1
jax: 0.10.0
libtpu: 0.0.40
codegen_flags: <defaults>
</compile_context>

<pallas_src>
import functools

import numpy as np
import jax
import jax.numpy as jnp
from jax import lax
from jax.experimental import pallas as pl
from jax.experimental.pallas import tpu as pltpu


def _relu(v):
    return jnp.maximum(v, 0.0)


def _tap_masks(H, W):
    """mask[k, 0, p] = 1 iff output pixel p's 3x3 tap k reads an in-bounds pixel.

    Tap k = kh*3 + kw uses spatial offset (dy, dx) = (kh-1, kw-1); the conv's
    zero padding becomes a 0 in the mask (applied after the lane roll).
    """
    HW = H * W
    m = np.zeros((9, 1, HW), dtype=np.float32)
    for kh in range(3):
        for kw in range(3):
            k = kh * 3 + kw
            dy, dx = kh - 1, kw - 1
            for h in range(H):
                for w in range(W):
                    if 0 <= h + dy < H and 0 <= w + dx < W:
                        m[k, 0, h * W + w] = 1.0
    return jnp.asarray(m)


def _residual_block_kernel(x_ref, mask_ref, w1_ref, b1_ref, w2_ref, b2_ref,
                           *rest, activation, W, identity_skip):
    # x_ref    : (1, Cin, HW)    flattened image for this batch element
    # mask_ref : (9, 1, HW)      per-tap boundary masks (shared, constant block)
    # w1_ref   : (9, Cout, Cin)  conv1 taps      b1_ref: (Cout, 1)
    # w2_ref   : (9, Cout, Cout) conv2 taps      b2_ref: (Cout, 1)
    # rest     : [wskip (Cout, Cin), bskip (Cout, 1)] when a 1x1 skip conv is
    #            present, then o_ref (1, Cout, HW)
    if identity_skip:
        (o_ref,) = rest
    else:
        wskip_ref, bskip_ref, o_ref = rest

    HW = x_ref.shape[-1]
    x = x_ref[0].astype(jnp.float32)                         # (Cin, HW)

    def conv3x3(inp, w_taps_ref):
        acc = None
        for k in range(9):                                   # static unroll, 9 taps
            dy, dx = k // 3 - 1, k % 3 - 1
            off = dy * W + dx                                 # flattened-HW offset
            if off == 0:
                shifted = inp                                 # center tap: no roll/mask
            else:
                # want out[p] = in[p + off]; pltpu.roll follows np.roll semantics,
                # so roll by the positive amount (-off) mod HW, then zero lanes
                # whose source pixel fell outside the image (the conv's padding).
                shifted = pltpu.roll(inp, shift=(-off) % HW, axis=1) * mask_ref[k]
            term = jnp.dot(w_taps_ref[k], shifted,
                           preferred_element_type=jnp.float32)        # (Cout, HW)
            acc = term if acc is None else acc + term
        return acc

    h = activation(conv3x3(x, w1_ref) + b1_ref[...])          # (Cout, HW)
    h = activation(conv3x3(h, w2_ref) + b2_ref[...])          # (Cout, HW)
    if identity_skip:
        skip = x                                              # Cin == Cout
    else:
        skip = jnp.dot(wskip_ref[...], x,
                       preferred_element_type=jnp.float32) + bskip_ref[...]
    o_ref[0] = (skip + h).astype(o_ref.dtype)


def residual_block(x, w1, b1, w2, b2, wskip=None, bskip=None, activation=_relu):
    """Pallas ResidualBlock forward.

    x: (B, Cin, H, W) NCHW.  Weights in PyTorch Conv2d layout:
    w1 (Cout, Cin, 3, 3), w2 (Cout, Cout, 3, 3), wskip (Cout, Cin, 1, 1) or
    None for the identity skip (requires Cin == Cout).
    """
    B, Cin, H, W = x.shape
    Cout = w1.shape[0]
    HW = H * W
    assert HW % 128 == 0, "H*W must be a multiple of 128 for lane-dense tiles"

    x_flat = x.reshape(B, Cin, HW).astype(jnp.float32)
    masks = _tap_masks(H, W)                                   # (9, 1, HW)

    def conv_taps(w):   # (Co, Ci, 3, 3) -> (9, Co, Ci), tap index k = kh*3+kw
        co, ci = w.shape[0], w.shape[1]
        return jnp.transpose(w.reshape(co, ci, 9), (2, 0, 1)).astype(jnp.float32)

    w1_t = conv_taps(w1)
    w2_t = conv_taps(w2)
    b1_c = b1.reshape(Cout, 1).astype(jnp.float32)
    b2_c = b2.reshape(Cout, 1).astype(jnp.float32)

    def full(shape):
        return pl.BlockSpec(shape, lambda b: (0,) * len(shape))

    identity_skip = wskip is None
    if identity_skip:
        assert Cin == Cout, "identity skip requires in_channels == out_channels"
        extra_args, extra_specs = (), ()
    else:
        extra_args = (wskip.reshape(Cout, Cin).astype(jnp.float32),
                      bskip.reshape(Cout, 1).astype(jnp.float32))
        extra_specs = (full((Cout, Cin)), full((Cout, 1)))

    grid_spec = pltpu.PrefetchScalarGridSpec(
        num_scalar_prefetch=0,
        grid=(B,),
        in_specs=[
            pl.BlockSpec((1, Cin, HW), lambda b: (b, 0, 0)),   # x (per-image block)
            full((9, 1, HW)),                                  # boundary masks
            full((9, Cout, Cin)),                              # w1 taps
            full((Cout, 1)),                                   # b1
            full((9, Cout, Cout)),                             # w2 taps
            full((Cout, 1)),                                   # b2
            *extra_specs,                                      # optional 1x1 skip
        ],
        out_specs=pl.BlockSpec((1, Cout, HW), lambda b: (b, 0, 0)),
    )

    out_flat = pl.pallas_call(
        functools.partial(_residual_block_kernel, activation=activation,
                          W=W, identity_skip=identity_skip),
        out_shape=jax.ShapeDtypeStruct((B, Cout, HW), x.dtype),
        grid_spec=grid_spec,
        compiler_params=pltpu.CompilerParams(
            dimension_semantics=("parallel",),
        ),
    )(x_flat, masks, w1_t, b1_c, w2_t, b2_c, *extra_args)

    return out_flat.reshape(B, Cout, H, W)


def residual_block_ref(x, w1, b1, w2, b2, wskip=None, bskip=None,
                       activation=_relu):
    """Pure-JAX reference reproducing the PyTorch ResidualBlock.forward."""
    dn = ("NCHW", "OIHW", "NCHW")

    def conv(inp, w, b, pad):
        y = lax.conv_general_dilated(
            inp, w, window_strides=(1, 1), padding=[(pad, pad), (pad, pad)],
            dimension_numbers=dn, precision=lax.Precision.HIGHEST)
        return y + b[None, :, None, None]

    x0 = x if wskip is None else conv(x, wskip, bskip, 0)
    d = activation(conv(x, w1, b1, 1))
    d = activation(conv(d, w2, b2, 1))
    return x0 + d


if __name__ == "__main__":
    key = jax.random.PRNGKey(0)
    B, Cin, Cout, H, W = 2, 4, 8, 16, 16
    ks = jax.random.split(key, 8)
    x = jax.random.normal(ks[0], (B, Cin, H, W), jnp.float32)
    w1 = jax.random.normal(ks[1], (Cout, Cin, 3, 3), jnp.float32) * 0.2
    b1 = jax.random.normal(ks[2], (Cout,), jnp.float32) * 0.1
    w2 = jax.random.normal(ks[3], (Cout, Cout, 3, 3), jnp.float32) * 0.2
    b2 = jax.random.normal(ks[4], (Cout,), jnp.float32) * 0.1
    wskip = jax.random.normal(ks[5], (Cout, Cin, 1, 1), jnp.float32) * 0.5
    bskip = jax.random.normal(ks[6], (Cout,), jnp.float32) * 0.1

    # Case 1: in_channels != out_channels  -> 1x1-conv skip transformation.
    out = jax.block_until_ready(residual_block(x, w1, b1, w2, b2, wskip, bskip))
    ref = residual_block_ref(x, w1, b1, w2, b2, wskip, bskip)
    assert out.shape == (B, Cout, H, W), out.shape
    # tolerance allows for MXU default-precision (bf16-pass) matmuls in-kernel
    assert jnp.allclose(out, ref, atol=5e-2, rtol=5e-2), float(
        jnp.max(jnp.abs(out - ref)))

    # Case 2: in_channels == out_channels -> identity skip.
    x2 = jax.random.normal(ks[7], (B, Cout, H, W), jnp.float32)
    out2 = jax.block_until_ready(residual_block(x2, w2, b1, w2, b2))
    ref2 = residual_block_ref(x2, w2, b1, w2, b2)
    assert jnp.allclose(out2, ref2, atol=5e-2, rtol=5e-2), float(
        jnp.max(jnp.abs(out2 - ref2)))

    print("KERNEL_OK")
</pallas_src>

<mosaic_0001>
module attributes {stable_mosaic.version = 11 : i64} {
  func.func @_residual_block_kernel(%arg0: i32, %arg1: memref<1x4x256xf32, #tpu.memory_space<vmem>>, %arg2: memref<9x1x256xf32, #tpu.memory_space<vmem>>, %arg3: memref<9x8x4xf32, #tpu.memory_space<vmem>>, %arg4: memref<8x1xf32, #tpu.memory_space<vmem>>, %arg5: memref<9x8x8xf32, #tpu.memory_space<vmem>>, %arg6: memref<8x1xf32, #tpu.memory_space<vmem>>, %arg7: memref<8x4xf32, #tpu.memory_space<vmem>>, %arg8: memref<8x1xf32, #tpu.memory_space<vmem>>, %arg9: memref<1x8x256xf32, #tpu.memory_space<vmem>>) attributes {dimension_semantics = [#tpu.dimension_semantics<parallel>], iteration_bounds = array<i64: 2>, scalar_prefetch = 0 : i64, scratch_operands = 0 : i64, tpu.core_type = #tpu.core_type<tc>, window_params = [{transform_indices = @transform_0, window_bounds = array<i64: 1, 4, 256>}, {pipeline_mode = #tpu.pipeline_mode<synchronous>, transform_indices = @transform_1, window_bounds = array<i64: 9, 1, 256>}, {pipeline_mode = #tpu.pipeline_mode<synchronous>, transform_indices = @transform_2, window_bounds = array<i64: 9, 8, 4>}, {pipeline_mode = #tpu.pipeline_mode<synchronous>, transform_indices = @transform_3, window_bounds = array<i64: 8, 1>}, {pipeline_mode = #tpu.pipeline_mode<synchronous>, transform_indices = @transform_4, window_bounds = array<i64: 9, 8, 8>}, {pipeline_mode = #tpu.pipeline_mode<synchronous>, transform_indices = @transform_5, window_bounds = array<i64: 8, 1>}, {pipeline_mode = #tpu.pipeline_mode<synchronous>, transform_indices = @transform_6, window_bounds = array<i64: 8, 4>}, {pipeline_mode = #tpu.pipeline_mode<synchronous>, transform_indices = @transform_7, window_bounds = array<i64: 8, 1>}, {transform_indices = @transform_8, window_bounds = array<i64: 1, 8, 256>}]} {
    %c0 = arith.constant 0 : index
    %c0_0 = arith.constant 0 : index
    %c0_1 = arith.constant 0 : index
    %0 = vector.load %arg1[%c0, %c0_0, %c0_1] : memref<1x4x256xf32, #tpu.memory_space<vmem>>, vector<1x4x256xf32>
    %1 = vector.shape_cast %0 : vector<1x4x256xf32> to vector<4x256xf32>
    %c17_i32 = arith.constant 17 : i32
    %2 = tpu.dynamic_rotate %1 by %c17_i32 dim 1 : vector<4x256xf32>, i32 -> vector<4x256xf32>
    %c0_2 = arith.constant 0 : index
    %c0_3 = arith.constant 0 : index
    %c0_4 = arith.constant 0 : index
    %3 = vector.load %arg2[%c0_2, %c0_3, %c0_4] : memref<9x1x256xf32, #tpu.memory_space<vmem>>, vector<1x1x256xf32>
    %4 = vector.shape_cast %3 : vector<1x1x256xf32> to vector<1x256xf32>
    %5 = vector.broadcast %4 : vector<1x256xf32> to vector<4x256xf32>
    %6 = arith.mulf %2, %5 : vector<4x256xf32>
    %c0_5 = arith.constant 0 : index
    %c0_6 = arith.constant 0 : index
    %c0_7 = arith.constant 0 : index
    %7 = vector.load %arg3[%c0_5, %c0_6, %c0_7] : memref<9x8x4xf32, #tpu.memory_space<vmem>>, vector<1x8x4xf32>
    %8 = vector.shape_cast %7 : vector<1x8x4xf32> to vector<8x4xf32>
    %cst = arith.constant dense<0.000000e+00> : vector<8x256xf32>
    %9 = tpu.matmul %8, %6, %cst {dimension_numbers = #tpu.dot_dimension_numbers<[1], [0], [0], [1], [0, 0, 1, 1], [], []>} : vector<8x4xf32>, vector<4x256xf32>, vector<8x256xf32> -> vector<8x256xf32>
    %c16_i32 = arith.constant 16 : i32
    %10 = tpu.dynamic_rotate %1 by %c16_i32 dim 1 : vector<4x256xf32>, i32 -> vector<4x256xf32>
    %c1 = arith.constant 1 : index
    %c0_8 = arith.constant 0 : index
    %c0_9 = arith.constant 0 : index
    %11 = vector.load %arg2[%c1, %c0_8, %c0_9] : memref<9x1x256xf32, #tpu.memory_space<vmem>>, vector<1x1x256xf32>
    %12 = vector.shape_cast %11 : vector<1x1x256xf32> to vector<1x256xf32>
    %13 = vector.broadcast %12 : vector<1x256xf32> to vector<4x256xf32>
    %14 = arith.mulf %10, %13 : vector<4x256xf32>
    %c1_10 = arith.constant 1 : index
    %c0_11 = arith.constant 0 : index
    %c0_12 = arith.constant 0 : index
    %15 = vector.load %arg3[%c1_10, %c0_11, %c0_12] : memref<9x8x4xf32, #tpu.memory_space<vmem>>, vector<1x8x4xf32>
    %16 = vector.shape_cast %15 : vector<1x8x4xf32> to vector<8x4xf32>
    %cst_13 = arith.constant dense<0.000000e+00> : vector<8x256xf32>
    %17 = tpu.matmul %16, %14, %cst_13 {dimension_numbers = #tpu.dot_dimension_numbers<[1], [0], [0], [1], [0, 0, 1, 1], [], []>} : vector<8x4xf32>, vector<4x256xf32>, vector<8x256xf32> -> vector<8x256xf32>
    %18 = arith.addf %9, %17 : vector<8x256xf32>
    %c15_i32 = arith.constant 15 : i32
    %19 = tpu.dynamic_rotate %1 by %c15_i32 dim 1 : vector<4x256xf32>, i32 -> vector<4x256xf32>
    %c2 = arith.constant 2 : index
    %c0_14 = arith.constant 0 : index
    %c0_15 = arith.constant 0 : index
    %20 = vector.load %arg2[%c2, %c0_14, %c0_15] : memref<9x1x256xf32, #tpu.memory_space<vmem>>, vector<1x1x256xf32>
    %21 = vector.shape_cast %20 : vector<1x1x256xf32> to vector<1x256xf32>
    %22 = vector.broadcast %21 : vector<1x256xf32> to vector<4x256xf32>
    %23 = arith.mulf %19, %22 : vector<4x256xf32>
    %c2_16 = arith.constant 2 : index
    %c0_17 = arith.constant 0 : index
    %c0_18 = arith.constant 0 : index
    %24 = vector.load %arg3[%c2_16, %c0_17, %c0_18] : memref<9x8x4xf32, #tpu.memory_space<vmem>>, vector<1x8x4xf32>
    %25 = vector.shape_cast %24 : vector<1x8x4xf32> to vector<8x4xf32>
    %cst_19 = arith.constant dense<0.000000e+00> : vector<8x256xf32>
    %26 = tpu.matmul %25, %23, %cst_19 {dimension_numbers = #tpu.dot_dimension_numbers<[1], [0], [0], [1], [0, 0, 1, 1], [], []>} : vector<8x4xf32>, vector<4x256xf32>, vector<8x256xf32> -> vector<8x256xf32>
    %27 = arith.addf %18, %26 : vector<8x256xf32>
    %c1_i32 = arith.constant 1 : i32
    %28 = tpu.dynamic_rotate %1 by %c1_i32 dim 1 : vector<4x256xf32>, i32 -> vector<4x256xf32>
    %c3 = arith.constant 3 : index
    %c0_20 = arith.constant 0 : index
    %c0_21 = arith.constant 0 : index
    %29 = vector.load %arg2[%c3, %c0_20, %c0_21] : memref<9x1x256xf32, #tpu.memory_space<vmem>>, vector<1x1x256xf32>
    %30 = vector.shape_cast %29 : vector<1x1x256xf32> to vector<1x256xf32>
    %31 = vector.broadcast %30 : vector<1x256xf32> to vector<4x256xf32>
    %32 = arith.mulf %28, %31 : vector<4x256xf32>
    %c3_22 = arith.constant 3 : index
    %c0_23 = arith.constant 0 : index
    %c0_24 = arith.constant 0 : index
    %33 = vector.load %arg3[%c3_22, %c0_23, %c0_24] : memref<9x8x4xf32, #tpu.memory_space<vmem>>, vector<1x8x4xf32>
    %34 = vector.shape_cast %33 : vector<1x8x4xf32> to vector<8x4xf32>
    %cst_25 = arith.constant dense<0.000000e+00> : vector<8x256xf32>
    %35 = tpu.matmul %34, %32, %cst_25 {dimension_numbers = #tpu.dot_dimension_numbers<[1], [0], [0], [1], [0, 0, 1, 1], [], []>} : vector<8x4xf32>, vector<4x256xf32>, vector<8x256xf32> -> vector<8x256xf32>
    %36 = arith.addf %27, %35 : vector<8x256xf32>
    %c4 = arith.constant 4 : index
    %c0_26 = arith.constant 0 : index
    %c0_27 = arith.constant 0 : index
    %37 = vector.load %arg3[%c4, %c0_26, %c0_27] : memref<9x8x4xf32, #tpu.memory_space<vmem>>, vector<1x8x4xf32>
    %38 = vector.shape_cast %37 : vector<1x8x4xf32> to vector<8x4xf32>
    %cst_28 = arith.constant dense<0.000000e+00> : vector<8x256xf32>
    %39 = tpu.matmul %38, %1, %cst_28 {dimension_numbers = #tpu.dot_dimension_numbers<[1], [0], [0], [1], [0, 0, 1, 1], [], []>} : vector<8x4xf32>, vector<4x256xf32>, vector<8x256xf32> -> vector<8x256xf32>
    %40 = arith.addf %36, %39 : vector<8x256xf32>
    %c255_i32 = arith.constant 255 : i32
    %41 = tpu.dynamic_rotate %1 by %c255_i32 dim 1 : vector<4x256xf32>, i32 -> vector<4x256xf32>
    %c5 = arith.constant 5 : index
    %c0_29 = arith.constant 0 : index
    %c0_30 = arith.constant 0 : index
    %42 = vector.load %arg2[%c5, %c0_29, %c0_30] : memref<9x1x256xf32, #tpu.memory_space<vmem>>, vector<1x1x256xf32>
    %43 = vector.shape_cast %42 : vector<1x1x256xf32> to vector<1x256xf32>
    %44 = vector.broadcast %43 : vector<1x256xf32> to vector<4x256xf32>
    %45 = arith.mulf %41, %44 : vector<4x256xf32>
    %c5_31 = arith.constant 5 : index
    %c0_32 = arith.constant 0 : index
    %c0_33 = arith.constant 0 : index
    %46 = vector.load %arg3[%c5_31, %c0_32, %c0_33] : memref<9x8x4xf32, #tpu.memory_space<vmem>>, vector<1x8x4xf32>
    %47 = vector.shape_cast %46 : vector<1x8x4xf32> to vector<8x4xf32>
    %cst_34 = arith.constant dense<0.000000e+00> : vector<8x256xf32>
    %48 = tpu.matmul %47, %45, %cst_34 {dimension_numbers = #tpu.dot_dimension_numbers<[1], [0], [0], [1], [0, 0, 1, 1], [], []>} : vector<8x4xf32>, vector<4x256xf32>, vector<8x256xf32> -> vector<8x256xf32>
    %49 = arith.addf %40, %48 : vector<8x256xf32>
    %c241_i32 = arith.constant 241 : i32
    %50 = tpu.dynamic_rotate %1 by %c241_i32 dim 1 : vector<4x256xf32>, i32 -> vector<4x256xf32>
    %c6 = arith.constant 6 : index
    %c0_35 = arith.constant 0 : index
    %c0_36 = arith.constant 0 : index
    %51 = vector.load %arg2[%c6, %c0_35, %c0_36] : memref<9x1x256xf32, #tpu.memory_space<vmem>>, vector<1x1x256xf32>
    %52 = vector.shape_cast %51 : vector<1x1x256xf32> to vector<1x256xf32>
    %53 = vector.broadcast %52 : vector<1x256xf32> to vector<4x256xf32>
    %54 = arith.mulf %50, %53 : vector<4x256xf32>
    %c6_37 = arith.constant 6 : index
    %c0_38 = arith.constant 0 : index
    %c0_39 = arith.constant 0 : index
    %55 = vector.load %arg3[%c6_37, %c0_38, %c0_39] : memref<9x8x4xf32, #tpu.memory_space<vmem>>, vector<1x8x4xf32>
    %56 = vector.shape_cast %55 : vector<1x8x4xf32> to vector<8x4xf32>
    %cst_40 = arith.constant dense<0.000000e+00> : vector<8x256xf32>
    %57 = tpu.matmul %56, %54, %cst_40 {dimension_numbers = #tpu.dot_dimension_numbers<[1], [0], [0], [1], [0, 0, 1, 1], [], []>} : vector<8x4xf32>, vector<4x256xf32>, vector<8x256xf32> -> vector<8x256xf32>
    %58 = arith.addf %49, %57 : vector<8x256xf32>
    %c240_i32 = arith.constant 240 : i32
    %59 = tpu.dynamic_rotate %1 by %c240_i32 dim 1 : vector<4x256xf32>, i32 -> vector<4x256xf32>
    %c7 = arith.constant 7 : index
    %c0_41 = arith.constant 0 : index
    %c0_42 = arith.constant 0 : index
    %60 = vector.load %arg2[%c7, %c0_41, %c0_42] : memref<9x1x256xf32, #tpu.memory_space<vmem>>, vector<1x1x256xf32>
    %61 = vector.shape_cast %60 : vector<1x1x256xf32> to vector<1x256xf32>
    %62 = vector.broadcast %61 : vector<1x256xf32> to vector<4x256xf32>
    %63 = arith.mulf %59, %62 : vector<4x256xf32>
    %c7_43 = arith.constant 7 : index
    %c0_44 = arith.constant 0 : index
    %c0_45 = arith.constant 0 : index
    %64 = vector.load %arg3[%c7_43, %c0_44, %c0_45] : memref<9x8x4xf32, #tpu.memory_space<vmem>>, vector<1x8x4xf32>
    %65 = vector.shape_cast %64 : vector<1x8x4xf32> to vector<8x4xf32>
    %cst_46 = arith.constant dense<0.000000e+00> : vector<8x256xf32>
    %66 = tpu.matmul %65, %63, %cst_46 {dimension_numbers = #tpu.dot_dimension_numbers<[1], [0], [0], [1], [0, 0, 1, 1], [], []>} : vector<8x4xf32>, vector<4x256xf32>, vector<8x256xf32> -> vector<8x256xf32>
    %67 = arith.addf %58, %66 : vector<8x256xf32>
    %c239_i32 = arith.constant 239 : i32
    %68 = tpu.dynamic_rotate %1 by %c239_i32 dim 1 : vector<4x256xf32>, i32 -> vector<4x256xf32>
    %c8 = arith.constant 8 : index
    %c0_47 = arith.constant 0 : index
    %c0_48 = arith.constant 0 : index
    %69 = vector.load %arg2[%c8, %c0_47, %c0_48] : memref<9x1x256xf32, #tpu.memory_space<vmem>>, vector<1x1x256xf32>
    %70 = vector.shape_cast %69 : vector<1x1x256xf32> to vector<1x256xf32>
    %71 = vector.broadcast %70 : vector<1x256xf32> to vector<4x256xf32>
    %72 = arith.mulf %68, %71 : vector<4x256xf32>
    %c8_49 = arith.constant 8 : index
    %c0_50 = arith.constant 0 : index
    %c0_51 = arith.constant 0 : index
    %73 = vector.load %arg3[%c8_49, %c0_50, %c0_51] : memref<9x8x4xf32, #tpu.memory_space<vmem>>, vector<1x8x4xf32>
    %74 = vector.shape_cast %73 : vector<1x8x4xf32> to vector<8x4xf32>
    %cst_52 = arith.constant dense<0.000000e+00> : vector<8x256xf32>
    %75 = tpu.matmul %74, %72, %cst_52 {dimension_numbers = #tpu.dot_dimension_numbers<[1], [0], [0], [1], [0, 0, 1, 1], [], []>} : vector<8x4xf32>, vector<4x256xf32>, vector<8x256xf32> -> vector<8x256xf32>
    %76 = arith.addf %67, %75 : vector<8x256xf32>
    %c0_53 = arith.constant 0 : index
    %c0_54 = arith.constant 0 : index
    %77 = vector.load %arg4[%c0_53, %c0_54] : memref<8x1xf32, #tpu.memory_space<vmem>>, vector<8x1xf32>
    %78 = vector.broadcast %77 : vector<8x1xf32> to vector<8x256xf32>
    %79 = arith.addf %76, %78 : vector<8x256xf32>
    %cst_55 = arith.constant 0.000000e+00 : f32
    %80 = vector.broadcast %cst_55 : f32 to vector<8x256xf32>
    %81 = arith.maximumf %79, %80 : vector<8x256xf32>
    %c17_i32_56 = arith.constant 17 : i32
    %82 = tpu.dynamic_rotate %81 by %c17_i32_56 dim 1 : vector<8x256xf32>, i32 -> vector<8x256xf32>
    %c0_57 = arith.constant 0 : index
    %c0_58 = arith.constant 0 : index
    %c0_59 = arith.constant 0 : index
    %83 = vector.load %arg2[%c0_57, %c0_58, %c0_59] : memref<9x1x256xf32, #tpu.memory_space<vmem>>, vector<1x1x256xf32>
    %84 = vector.shape_cast %83 : vector<1x1x256xf32> to vector<1x256xf32>
    %85 = vector.broadcast %84 : vector<1x256xf32> to vector<8x256xf32>
    %86 = arith.mulf %82, %85 : vector<8x256xf32>
    %c0_60 = arith.constant 0 : index
    %c0_61 = arith.constant 0 : index
    %c0_62 = arith.constant 0 : index
    %87 = vector.load %arg5[%c0_60, %c0_61, %c0_62] : memref<9x8x8xf32, #tpu.memory_space<vmem>>, vector<1x8x8xf32>
    %88 = vector.shape_cast %87 : vector<1x8x8xf32> to vector<8x8xf32>
    %cst_63 = arith.constant dense<0.000000e+00> : vector<8x256xf32>
    %89 = tpu.matmul %88, %86, %cst_63 {dimension_numbers = #tpu.dot_dimension_numbers<[1], [0], [0], [1], [0, 0, 1, 1], [], []>} : vector<8x8xf32>, vector<8x256xf32>, vector<8x256xf32> -> vector<8x256xf32>
    %c16_i32_64 = arith.constant 16 : i32
    %90 = tpu.dynamic_rotate %81 by %c16_i32_64 dim 1 : vector<8x256xf32>, i32 -> vector<8x256xf32>
    %c1_65 = arith.constant 1 : index
    %c0_66 = arith.constant 0 : index
    %c0_67 = arith.constant 0 : index
    %91 = vector.load %arg2[%c1_65, %c0_66, %c0_67] : memref<9x1x256xf32, #tpu.memory_space<vmem>>, vector<1x1x256xf32>
    %92 = vector.shape_cast %91 : vector<1x1x256xf32> to vector<1x256xf32>
    %93 = vector.broadcast %92 : vector<1x256xf32> to vector<8x256xf32>
    %94 = arith.mulf %90, %93 : vector<8x256xf32>
    %c1_68 = arith.constant 1 : index
    %c0_69 = arith.constant 0 : index
    %c0_70 = arith.constant 0 : index
    %95 = vector.load %arg5[%c1_68, %c0_69, %c0_70] : memref<9x8x8xf32, #tpu.memory_space<vmem>>, vector<1x8x8xf32>
    %96 = vector.shape_cast %95 : vector<1x8x8xf32> to vector<8x8xf32>
    %cst_71 = arith.constant dense<0.000000e+00> : vector<8x256xf32>
    %97 = tpu.matmul %96, %94, %cst_71 {dimension_numbers = #tpu.dot_dimension_numbers<[1], [0], [0], [1], [0, 0, 1, 1], [], []>} : vector<8x8xf32>, vector<8x256xf32>, vector<8x256xf32> -> vector<8x256xf32>
    %98 = arith.addf %89, %97 : vector<8x256xf32>
    %c15_i32_72 = arith.constant 15 : i32
    %99 = tpu.dynamic_rotate %81 by %c15_i32_72 dim 1 : vector<8x256xf32>, i32 -> vector<8x256xf32>
    %c2_73 = arith.constant 2 : index
    %c0_74 = arith.constant 0 : index
    %c0_75 = arith.constant 0 : index
    %100 = vector.load %arg2[%c2_73, %c0_74, %c0_75] : memref<9x1x256xf32, #tpu.memory_space<vmem>>, vector<1x1x256xf32>
    %101 = vector.shape_cast %100 : vector<1x1x256xf32> to vector<1x256xf32>
    %102 = vector.broadcast %101 : vector<1x256xf32> to vector<8x256xf32>
    %103 = arith.mulf %99, %102 : vector<8x256xf32>
    %c2_76 = arith.constant 2 : index
    %c0_77 = arith.constant 0 : index
    %c0_78 = arith.constant 0 : index
    %104 = vector.load %arg5[%c2_76, %c0_77, %c0_78] : memref<9x8x8xf32, #tpu.memory_space<vmem>>, vector<1x8x8xf32>
    %105 = vector.shape_cast %104 : vector<1x8x8xf32> to vector<8x8xf32>
    %cst_79 = arith.constant dense<0.000000e+00> : vector<8x256xf32>
    %106 = tpu.matmul %105, %103, %cst_79 {dimension_numbers = #tpu.dot_dimension_numbers<[1], [0], [0], [1], [0, 0, 1, 1], [], []>} : vector<8x8xf32>, vector<8x256xf32>, vector<8x256xf32> -> vector<8x256xf32>
    %107 = arith.addf %98, %106 : vector<8x256xf32>
    %c1_i32_80 = arith.constant 1 : i32
    %108 = tpu.dynamic_rotate %81 by %c1_i32_80 dim 1 : vector<8x256xf32>, i32 -> vector<8x256xf32>
    %c3_81 = arith.constant 3 : index
    %c0_82 = arith.constant 0 : index
    %c0_83 = arith.constant 0 : index
    %109 = vector.load %arg2[%c3_81, %c0_82, %c0_83] : memref<9x1x256xf32, #tpu.memory_space<vmem>>, vector<1x1x256xf32>
    %110 = vector.shape_cast %109 : vector<1x1x256xf32> to vector<1x256xf32>
    %111 = vector.broadcast %110 : vector<1x256xf32> to vector<8x256xf32>
    %112 = arith.mulf %108, %111 : vector<8x256xf32>
    %c3_84 = arith.constant 3 : index
    %c0_85 = arith.constant 0 : index
    %c0_86 = arith.constant 0 : index
    %113 = vector.load %arg5[%c3_84, %c0_85, %c0_86] : memref<9x8x8xf32, #tpu.memory_space<vmem>>, vector<1x8x8xf32>
    %114 = vector.shape_cast %113 : vector<1x8x8xf32> to vector<8x8xf32>
    %cst_87 = arith.constant dense<0.000000e+00> : vector<8x256xf32>
    %115 = tpu.matmul %114, %112, %cst_87 {dimension_numbers = #tpu.dot_dimension_numbers<[1], [0], [0], [1], [0, 0, 1, 1], [], []>} : vector<8x8xf32>, vector<8x256xf32>, vector<8x256xf32> -> vector<8x256xf32>
    %116 = arith.addf %107, %115 : vector<8x256xf32>
    %c4_88 = arith.constant 4 : index
    %c0_89 = arith.constant 0 : index
    %c0_90 = arith.constant 0 : index
    %117 = vector.load %arg5[%c4_88, %c0_89, %c0_90] : memref<9x8x8xf32, #tpu.memory_space<vmem>>, vector<1x8x8xf32>
    %118 = vector.shape_cast %117 : vector<1x8x8xf32> to vector<8x8xf32>
    %cst_91 = arith.constant dense<0.000000e+00> : vector<8x256xf32>
    %119 = tpu.matmul %118, %81, %cst_91 {dimension_numbers = #tpu.dot_dimension_numbers<[1], [0], [0], [1], [0, 0, 1, 1], [], []>} : vector<8x8xf32>, vector<8x256xf32>, vector<8x256xf32> -> vector<8x256xf32>
    %120 = arith.addf %116, %119 : vector<8x256xf32>
    %c255_i32_92 = arith.constant 255 : i32
    %121 = tpu.dynamic_rotate %81 by %c255_i32_92 dim 1 : vector<8x256xf32>, i32 -> vector<8x256xf32>
    %c5_93 = arith.constant 5 : index
    %c0_94 = arith.constant 0 : index
    %c0_95 = arith.constant 0 : index
    %122 = vector.load %arg2[%c5_93, %c0_94, %c0_95] : memref<9x1x256xf32, #tpu.memory_space<vmem>>, vector<1x1x256xf32>
    %123 = vector.shape_cast %122 : vector<1x1x256xf32> to vector<1x256xf32>
    %124 = vector.broadcast %123 : vector<1x256xf32> to vector<8x256xf32>
    %125 = arith.mulf %121, %124 : vector<8x256xf32>
    %c5_96 = arith.constant 5 : index
    %c0_97 = arith.constant 0 : index
    %c0_98 = arith.constant 0 : index
    %126 = vector.load %arg5[%c5_96, %c0_97, %c0_98] : memref<9x8x8xf32, #tpu.memory_space<vmem>>, vector<1x8x8xf32>
    %127 = vector.shape_cast %126 : vector<1x8x8xf32> to vector<8x8xf32>
    %cst_99 = arith.constant dense<0.000000e+00> : vector<8x256xf32>
    %128 = tpu.matmul %127, %125, %cst_99 {dimension_numbers = #tpu.dot_dimension_numbers<[1], [0], [0], [1], [0, 0, 1, 1], [], []>} : vector<8x8xf32>, vector<8x256xf32>, vector<8x256xf32> -> vector<8x256xf32>
    %129 = arith.addf %120, %128 : vector<8x256xf32>
    %c241_i32_100 = arith.constant 241 : i32
    %130 = tpu.dynamic_rotate %81 by %c241_i32_100 dim 1 : vector<8x256xf32>, i32 -> vector<8x256xf32>
    %c6_101 = arith.constant 6 : index
    %c0_102 = arith.constant 0 : index
    %c0_103 = arith.constant 0 : index
    %131 = vector.load %arg2[%c6_101, %c0_102, %c0_103] : memref<9x1x256xf32, #tpu.memory_space<vmem>>, vector<1x1x256xf32>
    %132 = vector.shape_cast %131 : vector<1x1x256xf32> to vector<1x256xf32>
    %133 = vector.broadcast %132 : vector<1x256xf32> to vector<8x256xf32>
    %134 = arith.mulf %130, %133 : vector<8x256xf32>
    %c6_104 = arith.constant 6 : index
    %c0_105 = arith.constant 0 : index
    %c0_106 = arith.constant 0 : index
    %135 = vector.load %arg5[%c6_104, %c0_105, %c0_106] : memref<9x8x8xf32, #tpu.memory_space<vmem>>, vector<1x8x8xf32>
    %136 = vector.shape_cast %135 : vector<1x8x8xf32> to vector<8x8xf32>
    %cst_107 = arith.constant dense<0.000000e+00> : vector<8x256xf32>
    %137 = tpu.matmul %136, %134, %cst_107 {dimension_numbers = #tpu.dot_dimension_numbers<[1], [0], [0], [1], [0, 0, 1, 1], [], []>} : vector<8x8xf32>, vector<8x256xf32>, vector<8x256xf32> -> vector<8x256xf32>
    %138 = arith.addf %129, %137 : vector<8x256xf32>
    %c240_i32_108 = arith.constant 240 : i32
    %139 = tpu.dynamic_rotate %81 by %c240_i32_108 dim 1 : vector<8x256xf32>, i32 -> vector<8x256xf32>
    %c7_109 = arith.constant 7 : index
    %c0_110 = arith.constant 0 : index
    %c0_111 = arith.constant 0 : index
    %140 = vector.load %arg2[%c7_109, %c0_110, %c0_111] : memref<9x1x256xf32, #tpu.memory_space<vmem>>, vector<1x1x256xf32>
    %141 = vector.shape_cast %140 : vector<1x1x256xf32> to vector<1x256xf32>
    %142 = vector.broadcast %141 : vector<1x256xf32> to vector<8x256xf32>
    %143 = arith.mulf %139, %142 : vector<8x256xf32>
    %c7_112 = arith.constant 7 : index
    %c0_113 = arith.constant 0 : index
    %c0_114 = arith.constant 0 : index
    %144 = vector.load %arg5[%c7_112, %c0_113, %c0_114] : memref<9x8x8xf32, #tpu.memory_space<vmem>>, vector<1x8x8xf32>
    %145 = vector.shape_cast %144 : vector<1x8x8xf32> to vector<8x8xf32>
    %cst_115 = arith.constant dense<0.000000e+00> : vector<8x256xf32>
    %146 = tpu.matmul %145, %143, %cst_115 {dimension_numbers = #tpu.dot_dimension_numbers<[1], [0], [0], [1], [0, 0, 1, 1], [], []>} : vector<8x8xf32>, vector<8x256xf32>, vector<8x256xf32> -> vector<8x256xf32>
    %147 = arith.addf %138, %146 : vector<8x256xf32>
    %c239_i32_116 = arith.constant 239 : i32
    %148 = tpu.dynamic_rotate %81 by %c239_i32_116 dim 1 : vector<8x256xf32>, i32 -> vector<8x256xf32>
    %c8_117 = arith.constant 8 : index
    %c0_118 = arith.constant 0 : index
    %c0_119 = arith.constant 0 : index
    %149 = vector.load %arg2[%c8_117, %c0_118, %c0_119] : memref<9x1x256xf32, #tpu.memory_space<vmem>>, vector<1x1x256xf32>
    %150 = vector.shape_cast %149 : vector<1x1x256xf32> to vector<1x256xf32>
    %151 = vector.broadcast %150 : vector<1x256xf32> to vector<8x256xf32>
    %152 = arith.mulf %148, %151 : vector<8x256xf32>
    %c8_120 = arith.constant 8 : index
    %c0_121 = arith.constant 0 : index
    %c0_122 = arith.constant 0 : index
    %153 = vector.load %arg5[%c8_120, %c0_121, %c0_122] : memref<9x8x8xf32, #tpu.memory_space<vmem>>, vector<1x8x8xf32>
    %154 = vector.shape_cast %153 : vector<1x8x8xf32> to vector<8x8xf32>
    %cst_123 = arith.constant dense<0.000000e+00> : vector<8x256xf32>
    %155 = tpu.matmul %154, %152, %cst_123 {dimension_numbers = #tpu.dot_dimension_numbers<[1], [0], [0], [1], [0, 0, 1, 1], [], []>} : vector<8x8xf32>, vector<8x256xf32>, vector<8x256xf32> -> vector<8x256xf32>
    %156 = arith.addf %147, %155 : vector<8x256xf32>
    %c0_124 = arith.constant 0 : index
    %c0_125 = arith.constant 0 : index
    %157 = vector.load %arg6[%c0_124, %c0_125] : memref<8x1xf32, #tpu.memory_space<vmem>>, vector<8x1xf32>
    %158 = vector.broadcast %157 : vector<8x1xf32> to vector<8x256xf32>
    %159 = arith.addf %156, %158 : vector<8x256xf32>
    %cst_126 = arith.constant 0.000000e+00 : f32
    %160 = vector.broadcast %cst_126 : f32 to vector<8x256xf32>
    %161 = arith.maximumf %159, %160 : vector<8x256xf32>
    %c0_127 = arith.constant 0 : index
    %c0_128 = arith.constant 0 : index
    %162 = vector.load %arg7[%c0_127, %c0_128] : memref<8x4xf32, #tpu.memory_space<vmem>>, vector<8x4xf32>
    %cst_129 = arith.constant dense<0.000000e+00> : vector<8x256xf32>
    %163 = tpu.matmul %162, %1, %cst_129 {dimension_numbers = #tpu.dot_dimension_numbers<[1], [0], [0], [1], [0, 0, 1, 1], [], []>} : vector<8x4xf32>, vector<4x256xf32>, vector<8x256xf32> -> vector<8x256xf32>
    %c0_130 = arith.constant 0 : index
    %c0_131 = arith.constant 0 : index
    %164 = vector.load %arg8[%c0_130, %c0_131] : memref<8x1xf32, #tpu.memory_space<vmem>>, vector<8x1xf32>
    %165 = vector.broadcast %164 : vector<8x1xf32> to vector<8x256xf32>
    %166 = arith.addf %163, %165 : vector<8x256xf32>
    %167 = arith.addf %166, %161 : vector<8x256xf32>
    %c0_132 = arith.constant 0 : index
    %c0_133 = arith.constant 0 : index
    %c0_134 = arith.constant 0 : index
    %168 = vector.load %arg9[%c0_132, %c0_133, %c0_134] : memref<1x8x256xf32, #tpu.memory_space<vmem>>, vector<1x8x256xf32>
    %169 = vector.shape_cast %168 : vector<1x8x256xf32> to vector<8x256xf32>
    %170 = vector.shape_cast %167 : vector<8x256xf32> to vector<1x8x256xf32>
    tpu.vector_store %arg9[%c0_132, %c0_133, %c0_134], %170 {strides = array<i32>} : memref<1x8x256xf32, #tpu.memory_space<vmem>>, vector<1x8x256xf32>,
    return
  }
  func.func @transform_0(%arg0: i32) -> (i32, i32, i32) {
    %c0_i32 = arith.constant 0 : i32
    %c0_i32_0 = arith.constant 0 : i32
    %c0_i32_1 = arith.constant 0 : i32
    return %arg0, %c0_i32, %c0_i32_0 : i32, i32, i32
  }
  func.func @transform_1(%arg0: i32) -> (i32, i32, i32) {
    %c0_i32 = arith.constant 0 : i32
    %c0_i32_0 = arith.constant 0 : i32
    %c0_i32_1 = arith.constant 0 : i32
    %c0_i32_2 = arith.constant 0 : i32
    return %c0_i32, %c0_i32_0, %c0_i32_1 : i32, i32, i32
  }
  func.func @transform_2(%arg0: i32) -> (i32, i32, i32) {
    %c0_i32 = arith.constant 0 : i32
    %c0_i32_0 = arith.constant 0 : i32
    %c0_i32_1 = arith.constant 0 : i32
    %c0_i32_2 = arith.constant 0 : i32
    return %c0_i32, %c0_i32_0, %c0_i32_1 : i32, i32, i32
  }
  func.func @transform_3(%arg0: i32) -> (i32, i32) {
    %c0_i32 = arith.constant 0 : i32
    %c0_i32_0 = arith.constant 0 : i32
    %c0_i32_1 = arith.constant 0 : i32
    return %c0_i32, %c0_i32_0 : i32, i32
  }
  func.func @transform_4(%arg0: i32) -> (i32, i32, i32) {
    %c0_i32 = arith.constant 0 : i32
    %c0_i32_0 = arith.constant 0 : i32
    %c0_i32_1 = arith.constant 0 : i32
    %c0_i32_2 = arith.constant 0 : i32
    return %c0_i32, %c0_i32_0, %c0_i32_1 : i32, i32, i32
  }
  func.func @transform_5(%arg0: i32) -> (i32, i32) {
    %c0_i32 = arith.constant 0 : i32
    %c0_i32_0 = arith.constant 0 : i32
    %c0_i32_1 = arith.constant 0 : i32
    return %c0_i32, %c0_i32_0 : i32, i32
  }
  func.func @transform_6(%arg0: i32) -> (i32, i32) {
    %c0_i32 = arith.constant 0 : i32
    %c0_i32_0 = arith.constant 0 : i32
    %c0_i32_1 = arith.constant 0 : i32
    return %c0_i32, %c0_i32_0 : i32, i32
  }
  func.func @transform_7(%arg0: i32) -> (i32, i32) {
    %c0_i32 = arith.constant 0 : i32
    %c0_i32_0 = arith.constant 0 : i32
    %c0_i32_1 = arith.constant 0 : i32
    return %c0_i32, %c0_i32_0 : i32, i32
  }
  func.func @transform_8(%arg0: i32) -> (i32, i32, i32) {
    %c0_i32 = arith.constant 0 : i32
    %c0_i32_0 = arith.constant 0 : i32
    %c0_i32_1 = arith.constant 0 : i32
    return %arg0, %c0_i32, %c0_i32_0 : i32, i32, i32
  }
}

</mosaic_0001>

<bundles_post_ra>
// kernel: tpu_custom_call.1
= control target key start
LH: loop header
LB: loop body
LE: loop exit
PB: predicated region body
PF: predicated region fallthrough
CT: control target
= control target key end

     0   :  { %13 = vsyncpa [#allocation3], 0  ;;  %s2943_s0 = inlined_call_operand.vmem [shape: f32[2,4,256], index: 0, kind: input, shape index: {}]   ;;  %s2944_s1 = inlined_call_operand.vmem [shape: f32[9,1,256], index: 1, kind: input, shape index: {}]   ;;  %s2945_s2 = inlined_call_operand.vmem [shape: f32[9,8,4], index: 2, kind: input, shape index: {}]   ;;  %s2946_s3 = inlined_call_operand.vmem [shape: f32[8,1], index: 3, kind: input, shape index: {}]   ;;  %s2947_s4 = inlined_call_operand.vmem [shape: f32[9,8,8], index: 4, kind: input, shape index: {}]   ;;  %s2948_s5 = inlined_call_operand.vmem [shape: f32[8,1], index: 5, kind: input, shape index: {}]   ;;  %s2949_s6 = inlined_call_operand.vmem [shape: f32[8,4], index: 6, kind: input, shape index: {}]   ;;  %s2950_s7 = inlined_call_operand.vmem [shape: f32[8,1], index: 7, kind: input, shape index: {}]   ;;  %s2951_s8 = inlined_call_operand.hbm [shape: f32[2,8,256], index: 8, kind: output, shape index: {}]  }
   0x1   :  { %15 = vsyncpa [#allocation3 + $0x1], 0  ;;  %s2457_s27 = smov 0   ;;  %s2459_s28 = smov 0  }
   0x2   :  { %s2461_s29 = smov 0   ;;  %s2463_s30 = smov 0  }
   0x3 LB: > { %s2478_s9 = sadd.s32 4294967295, %s2399_s30   ;;  %s2177_s10 = sadd.s32 4294967294, %s2399_s30   ;;  %s2399_s30 = sphi %s2463_s30, %s2960_s30   ;;  %s2395_s29 = sphi %s2461_s29, %s2959_s29   ;;  %s2391_s28 = sphi %s2459_s28, %s2958_s28   ;;  %s2387_s27 = sphi %s2457_s27, %s2957_s27  }
   0x4   : > { %s2482_s11 = sadd.s32 1, %s2399_s30   ;;  %s201_s12 = sadd.s32 1, %s2395_s29 }
   0x5   : > { %s198_s13 = ssub.s32 %s2399_s30, %s2482_s11  ;;  %p211_p0 = scmp.ne.s32.totalorder %s2395_s29, %s2391_s28 }
   0x6   : > { %p199_p1 = scmp.eq.s32.totalorder %s198_s13, 0  ;;  %p212_p2 = scmp.eq.s32.totalorder %s2478_s9, 1 }
   0x7   : > { %p217_p3 = scmp.ne.s32.totalorder %s2391_s28, %s2387_s27  ;;  %p218_p4 = scmp.eq.s32.totalorder %s2177_s10, 1 }
   0x8   : > { %s2493_s14 = scalar_select %p199_p1, %s2395_s29, %s201_s12  }
   0x9   : > { %p2495_p5 = por %p212_p2, %p211_p0  ;;  %p2499_p6 = por %p218_p4, %p217_p3 }
   0xa   : > { %p2180_p7 = scmp.ge.s32.totalorder %s2399_s30, 1  ;;  %p265_p8 = scmp.lt.s32.totalorder %s2399_s30, 3 }
   0xc   : > { %p266_p9 = pnand %p2180_p7, %p265_p8 }
   0xd   : > { %p299_p10 = scmp.lt.s32.totalorder (!%p266_p9), %s2478_s9, 1  ;;  %v2401_v0 = vmov (!%p266_p9), 0.0   ;;  %s2402_s22 = smov (!%p266_p9), 17   ;;  %v1236_v3 = vld [vmem:[%s2946_s3] sm:$0xff] (!%p266_p9)  ;;  %v2410_v4 = vmov (!%p266_p9), 0   ;;  %v312_v5 = vlaneseq (!%p266_p9)  ;;  %vm360_vm2 = vcmask (!%p266_p9), 1043456  }
   0xe   : > { %269 = sbr.rel (%p266_p9) target bundleno = 851 (0x353), region = 52  ;;  %431 = vmatprep.mubr.f32.mxu0 (!%p266_p9), %v2401_v0  ;;  %1333 = vmatprep.mubr.f32.mxu1 (!%p266_p9), %v2401_v0  ;;  %s2403_s23 = smov (!%p266_p9), 16   ;;  %v317_v10 = vld [vmem:[%s2944_s1] sm:$0x3] (!%p266_p9)  ;;  %v2184_v11 = vld [vmem:[%s2944_s1 + $0x2] sm:$0x3] (!%p266_p9) }
   0xf   : > { %s2404_s24 = smov (!%p266_p9), 15   ;;  %s2405_s25 = smov (!%p266_p9), 1   ;;  %2334 = vset.pattern.permute.xlu0 (!%p266_p9), %v2410_v4  ;;  %2335 = vset.pattern.permute.xlu1 (!%p266_p9), %v2410_v4  ;;  %v320_v6 = vshrl.u32 (!%p266_p9), %v312_v5, 7  ;;  %v2553_v7 = vand.u32 (!%p266_p9), 127, %v312_v5  ;;  %v2192_v18 = vld [vmem:[%s2944_s1 + $0x4] sm:$0x3] (!%p266_p9) }
  0x10   : > { %s2406_s26 = smov (!%p266_p9), 127   ;;  %s2407_s10 = smov (!%p266_p9), 113   ;;  %v2185_v30 = vld [vmem:[%s2945_s2 + $0x8] sm:$0xff] (!%p266_p9)  ;;  %vm356_vm4 = vcmask (!%p266_p9), 31744   ;;  %v2197_v34 = vld [vmem:[%s2944_s1 + $0x6] sm:$0x3] (!%p266_p9) }
  0x11   : > { %s2408_s12 = smov (!%p266_p9), 112   ;;  %s2952_s13 = smov (!%p266_p9), 111   ;;  %v2555_v8 = vsub.s32 (!%p266_p9), 0, %v320_v6  ;;  %v2557_v9 = vsub.s32 (!%p266_p9), 1, %v320_v6  ;;  %vm314_vm0 = vcmp.lt.s32.totalorder (!%p266_p9), %v2553_v7, 17  ;;  %vm336_vm1 = vcmp.lt.s32.totalorder (!%p266_p9), %v2553_v7, 16 }
  0x12   : > { %vm522_vm3 = vcmp.lt.s32.totalorder (!%p266_p9), %v2553_v7, 15  ;;  %vm628_vm5 = vcmp.lt.s32.totalorder (!%p266_p9), %v2553_v7, 1  ;;  %v331_v43 = vld [vmem:[%s2945_s2] sm:$0xff] (!%p266_p9)  ;;  %v2193_v48 = vld [vmem:[%s2945_s2 + $0x10] sm:$0xff] (!%p266_p9)  ;;  %v2206_v49 = vld [vmem:[%s2944_s1 + $0xa] sm:$0x3] (!%p266_p9) }
  0x13   : > { %v2567_v14 = vrot.slane (!%p266_p9), %v317_v10, %v2557_v9  ;;  %v2571_v15 = vrot.slane (!%p266_p9), %v2184_v11, %v2555_v8  ;;  %v2574_v16 = vrot.slane (!%p266_p9), %v2184_v11, %v2557_v9  ;;  %v2577_v17 = vrot.slane (!%p266_p9), %v317_v10, %v2555_v8  ;;  %v2198_v54 = vld [vmem:[%s2945_s2 + $0x18] sm:$0xff] (!%p266_p9)  ;;  %v2211_v56 = vld [vmem:[%s2944_s1 + $0xc] sm:$0x3] (!%p266_p9)  ;;  %v2216_v5 = vld [vmem:[%s2944_s1 + $0xe] sm:$0x3] (!%p266_p9) }
  0x14   : > { %v2595_v28 = vrot.slane (!%p266_p9), %v2192_v18, %v2557_v9  ;;  %v2614_v36 = vrot.slane (!%p266_p9), %v2192_v18, %v2555_v8  ;;  %v2621_v39 = vrot.slane (!%p266_p9), %v2197_v34, %v2557_v9  ;;  %v2633_v45 = vrot.slane (!%p266_p9), %v2197_v34, %v2555_v8 }
  0x15   : > { %s300_s17 = scalar_select %p299_p10, %s2478_s9, 1  ;;  %vm816_vm6 = vcmp.lt.s32.totalorder %v2553_v7, 127  ;;  %v2653_v52 = vrot.slane %v2206_v49, %v2557_v9  ;;  %vm922_vm7 = vcmp.lt.s32.totalorder %v2553_v7, 113  ;;  %v2669_v59 = vrot.slane %v2206_v49, %v2555_v8 }
  0x16   : > { %v2676_v61 = vrot.slane %v2211_v56, %v2557_v9  ;;  %vm1028_vm8 = vcmp.lt.s32.totalorder %v2553_v7, 112  ;;  %v2692_v11 = vrot.slane %v2211_v56, %v2555_v8  ;;  %vm1134_vm9 = vcmp.lt.s32.totalorder %v2553_v7, 111 }
  0x17   : > { %s2251_s18 = sshll.u32 %s300_s17, 3  ;;  %vm1265_vm10 = vcmask 64512  }
  0x18   : > { %s303_s21 = scalar_lea.vmem %s2943_s0, %s2251_s18 }
  0x19   : > { %v2512_v1 = vld [vmem:[%s303_s21] sm:$0xff]  ;;  %s296_s21 = sand.u32 1, %s2391_s28  }
  0x1a   : > { %308 = vrot.lane.b32.xlu1 %v2512_v1, %s2402_s22  ;;  %332 = vrot.lane.b32.xlu0 %v2512_v1, %s2403_s23  ;;  %v2520_v2 = vcombine.high %v2512_v1, %v2512_v1 }
  0x1e   : > { %310 = vrot.lane.b32.xlu1 %v2520_v2, %s2402_s22  ;;  %334 = vrot.lane.b32.xlu0 %v2520_v2, %s2403_s23 }
  0x22   : > { %520 = vrot.lane.b32.xlu1 %v2520_v2, %s2404_s24  ;;  %518 = vrot.lane.b32.xlu0 %v2512_v1, %s2404_s24 }
  0x26   : > { %626 = vrot.lane.b32.xlu1 %v2520_v2, %s2405_s25  ;;  %624 = vrot.lane.b32.xlu0 %v2512_v1, %s2405_s25 }
  0x2a   : > { %814 = vrot.lane.b32.xlu1 %v2520_v2, %s2406_s26  ;;  %812 = vrot.lane.b32.xlu0 %v2512_v1, %s2406_s26 }
  0x2e   : > { %920 = vrot.lane.b32.xlu1 %v2520_v2, %s2407_s10  ;;  %918 = vrot.lane.b32.xlu0 %v2512_v1, %s2407_s10 }
  0x32   : > { %1026 = vrot.lane.b32.xlu1 %v2520_v2, %s2408_s12  ;;  %1024 = vrot.lane.b32.xlu0 %v2512_v1, %s2408_s12 }
  0x36   : > { %1132 = vrot.lane.b32.xlu1 %v2520_v2, %s2952_s13  ;;  %1130 = vrot.lane.b32.xlu0 %v2512_v1, %s2952_s13 }
  0x3a   : > { %1239 = vperm.xlu0 %2334, %v1236_v3   ;;  %v2202_v3 = vld [vmem:[%s2945_s2 + $0x20] sm:$0xff] }
  0x8c   : > { %v309_v12 = vpop.permute.xlu1 %308  ;;  %v333_v13 = vpop.permute.xlu0 %332 }
  0x90   : > { %v311_v19 = vpop.permute.xlu1 %310  ;;  %v335_v20 = vpop.permute.xlu0 %334 }
  0x91   : > { %v315_v21 = vsel %vm314_vm0, %v309_v12, %v311_v19  ;;  %v316_v22 = vsel %vm314_vm0, %v311_v19, %v309_v12  ;;  %v337_v23 = vsel %vm336_vm1, %v333_v13, %v335_v20  ;;  %v338_v24 = vsel %vm336_vm1, %v335_v20, %v333_v13  ;;  %v2207_v20 = vld [vmem:[%s2945_s2 + $0x28] sm:$0xff] }
  0x92   : > { %v330_v25 = vmul.f32 %v2567_v14, %v315_v21  ;;  %v352_v26 = vmul.f32 %v2571_v15, %v338_v24  ;;  %v353_v27 = vmul.f32 %v2574_v16, %v337_v23  ;;  %v329_v29 = vmul.f32 %v2577_v17, %v316_v22  ;;  %v2221_v22 = vld [vmem:[%s2944_s1 + $0x10] sm:$0x3] }
  0x93   : > { %v2699_v13 = vrot.slane %v2216_v5, %v2557_v9 }
  0x94   : > { %2186 = vmatprep.subr.msk.mxu0 %vm360_vm2, %v353_v27  ;;  %v521_v31 = vpop.permute.xlu1 %520  ;;  %v519_v32 = vpop.permute.xlu0 %518  ;;  %v2722_v27 = vrot.slane %v2221_v22, %v2557_v9 }
  0x95   : > { %2187 = vmatpush1.msk.msra.mxu0 %vm360_vm2, %v352_v26  ;;  %v523_v33 = vsel %vm522_vm3, %v519_v32, %v521_v31  ;;  %v524_v37 = vsel %vm522_vm3, %v521_v31, %v519_v32  ;;  %v2212_v31 = vld [vmem:[%s2945_s2 + $0x30] sm:$0xff] }
  0x96   : > { %2188 = vmatmul.mubr.msk.f32.vlgmr.msra.gmra.mrb[0].mxu0 %vm356_vm4, %v2185_v30  ;;  %2189 = vmatprep.subr.msk.mxu0 %vm360_vm2, %v330_v25  ;;  %v539_v35 = vmul.f32 %v2595_v28, %v523_v33  ;;  %v538_v42 = vmul.f32 %v2614_v36, %v524_v37  ;;  %v2715_v25 = vrot.slane %v2216_v5, %v2555_v8 }
  0x97   : > { %2190 = vmatpush1.msk.msra.mxu0 %vm360_vm2, %v329_v29  ;;  %511 = vmatprep.mubr.f32.mxu0 %v2401_v0  ;;  %v2734_v33 = vrot.slane %v2221_v22, %v2555_v8  ;;  %v2222_v8 = vld [vmem:[%s2945_s2 + $0x40] sm:$0xff] }
  0x98   : > { %2194 = vmatprep.subr.msk.mxu0 %vm360_vm2, %v539_v35  ;;  %v627_v38 = vpop.permute.xlu1 %626  ;;  %v625_v40 = vpop.permute.xlu0 %624  ;;  %v2217_v35 = vld [vmem:[%s2945_s2 + $0x38] sm:$0xff] }
  0x99   : > { %v629_v41 = vsel %vm628_vm5, %v625_v40, %v627_v38  ;;  %v630_v46 = vsel %vm628_vm5, %v627_v38, %v625_v40 }
  0x9a   : > { %v645_v44 = vmul.f32 %v2621_v39, %v629_v41  ;;  %v644_v47 = vmul.f32 %v2633_v45, %v630_v46  ;;  %v2019_v46 = vld [vmem:[%s2950_s7] sm:$0xff] }
  0x9c   : > { %v815_v50 = vpop.permute.xlu1 %814  ;;  %v813_v51 = vpop.permute.xlu0 %812 }
  0x9d   : > { %v818_v53 = vsel %vm816_vm6, %v815_v50, %v813_v51  ;;  %v817_v60 = vsel %vm816_vm6, %v813_v51, %v815_v50 }
  0x9e   : > { %2191 = vmatmul.mubr.msk.f32.vlgmr.msra.gmra.mrb[0].mxu0 %vm356_vm4, %v331_v43  ;;  %v833_v55 = vmul.f32 %v2653_v52, %v818_v53  ;;  %v832_v63 = vmul.f32 %v2669_v59, %v817_v60 }
  0x9f   : > { %2195 = vmatpush1.msk.msra.mxu0 %vm360_vm2, %v538_v42  ;;  %615 = vmatprep.mubr.f32.mxu0 %v2401_v0 }
  0xa0   : > { %2199 = vmatprep.subr.msk.mxu0 %vm360_vm2, %v645_v44  ;;  %v921_v57 = vpop.permute.xlu1 %920  ;;  %v919_v58 = vpop.permute.xlu0 %918  ;;  %v2018_v44 = vld [vmem:[%s2949_s6] sm:$0xff] }
  0xa1   : > { %v924_v62 = vsel %vm922_vm7, %v921_v57, %v919_v58  ;;  %v923_v12 = vsel %vm922_vm7, %v919_v58, %v921_v57 }
  0xa2   : > { %v939_v4 = vmul.f32 %v2676_v61, %v924_v62  ;;  %v938_v19 = vmul.f32 %v2692_v11, %v923_v12 }
  0xa4   : > { %v1027_v6 = vpop.permute.xlu1 %1026  ;;  %v1025_v10 = vpop.permute.xlu0 %1024 }
  0xa5   : > { %v1030_v18 = vsel %vm1028_vm8, %v1027_v6, %v1025_v10  ;;  %v1029_v26 = vsel %vm1028_vm8, %v1025_v10, %v1027_v6 }
  0xa6   : > { %2196 = vmatmul.mubr.msk.f32.vlgmr.msra.gmra.mrb[0].mxu0 %vm356_vm4, %v2193_v48  ;;  %v1045_v21 = vmul.f32 %v2699_v13, %v1030_v18  ;;  %v1044_v30 = vmul.f32 %v2715_v25, %v1029_v26  ;;  %v2229_v18 = vld [vmem:[%s2947_s4 + $0x10] sm:$0xff] }
  0xa7   : > { %2200 = vmatpush1.msk.msra.mxu0 %vm360_vm2, %v644_v47  ;;  %721 = vmatprep.mubr.f32.mxu0 %v2401_v0 }
  0xa8   : > { %2203 = vmatprep.subr.msk.mxu0 %vm360_vm2, %v2520_v2  ;;  %v1133_v23 = vpop.permute.xlu1 %1132  ;;  %v1131_v24 = vpop.permute.xlu0 %1130 }
  0xa9   : > { %v1136_v29 = vsel %vm1134_vm9, %v1133_v23, %v1131_v24  ;;  %v1135_v9 = vsel %vm1134_vm9, %v1131_v24, %v1133_v23 }
  0xaa   : > { %v1151_v32 = vmul.f32 %v2722_v27, %v1136_v29  ;;  %v1150_v34 = vmul.f32 %v2734_v33, %v1135_v9  ;;  %v2233_v29 = vld [vmem:[%s2947_s4 + $0x20] sm:$0xff] }
  0xae   : > { %2201 = vmatmul.mubr.msk.f32.vlgmr.msra.gmra.mrb[0].mxu0 %vm356_vm4, %v2198_v54 }
  0xaf   : > { %2204 = vmatpush1.msk.msra.mxu0 %vm360_vm2, %v2512_v1  ;;  %803 = vmatprep.mubr.f32.mxu0 %v2401_v0 }
  0xb0   : > { %2208 = vmatprep.subr.msk.mxu0 %vm360_vm2, %v833_v55  ;;  %v2226_v55 = vld [vmem:[%s2947_s4 + $0x8] sm:$0xff] }
  0xb6   : > { %2205 = vmatmul.mubr.msk.f32.vlgmr.msra.gmra.mrb[0].mxu0 %vm356_vm4, %v2202_v3 }
  0xb7   : > { %2209 = vmatpush1.msk.msra.mxu0 %vm360_vm2, %v832_v63  ;;  %909 = vmatprep.mubr.f32.mxu0 %v2401_v0 }
  0xb8   : > { %2213 = vmatprep.subr.msk.mxu0 %vm360_vm2, %v939_v4 }
  0xb9   : > { %v1240_v37 = vpop.permute.xlu0 %1239 }
  0xbe   : > { %2210 = vmatmul.mubr.msk.f32.vlgmr.msra.gmra.mrb[0].mxu0 %vm356_vm4, %v2207_v20 }
  0xbf   : > { %2214 = vmatpush1.msk.msra.mxu0 %vm360_vm2, %v938_v19  ;;  %1015 = vmatprep.mubr.f32.mxu0 %v2401_v0 }
  0xc0   : > { %2218 = vmatprep.subr.msk.mxu0 %vm360_vm2, %v1045_v21  ;;  %v2231_v21 = vld [vmem:[%s2947_s4 + $0x18] sm:$0xff] }
  0xc6   : > { %2215 = vmatmul.mubr.msk.f32.vlgmr.msra.gmra.mrb[0].mxu0 %vm356_vm4, %v2212_v31 }
  0xc7   : > { %2219 = vmatpush1.msk.msra.mxu0 %vm360_vm2, %v1044_v30  ;;  %1121 = vmatprep.mubr.f32.mxu0 %v2401_v0 }
  0xc8   : > { %2223 = vmatprep.subr.msk.mxu0 %vm360_vm2, %v1151_v32 }
  0xce   : > { %2220 = vmatmul.mubr.msk.f32.vlgmr.msra.gmra.mrb[0].mxu0 %vm356_vm4, %v2217_v35 }
  0xcf   : > { %2224 = vmatpush1.msk.msra.mxu0 %vm360_vm2, %v1150_v34  ;;  %1227 = vmatprep.mubr.f32.mxu0 %v2401_v0 }
  0xd0   : > { %2243 = vmatprep.subr.msk.mxu0 %vm360_vm2, %v2520_v2 }
  0xd6   : > { %2225 = vmatmul.mubr.msk.f32.vlgmr.msra.gmra.mrb[0].mxu0 %vm356_vm4, %v2222_v8 }
  0xd7   : > { %2244 = vmatpush1.msk.msra.mxu0 %vm360_vm2, %v2512_v1  ;;  %2092 = vmatprep.mubr.f32.mxu0 %v2401_v0  ;;  %v2008_v1 = vld [vmem:[%s2948_s5] sm:$0xff] }
  0xda   : > { %2245 = vmatmul.mubr.msk.f32.vlgmr.msra.gmra.mrb[2].mxu0 %vm356_vm4, %v2018_v44 }
 0x1a9   : > { %v1229_v38 = vpop.f32.mrb[0].mxu0 }
 0x1aa   : > { %v1242_v40 = vadd.f32 %v1240_v37, %v1229_v38  ;;  %v1231_v41 = vpop.f32.mrb[1].mxu0 }
 0x1ab   : > { %v1243_v43 = vadd.f32 %v1240_v37, %v1231_v41 }
 0x1ac   : > { %v2756_v42 = vmax.f32 %v1242_v40, 0.0 }
 0x1ad   : > { %v2762_v2 = vmax.f32 %v1243_v43, 0.0  ;;  %v2239_v43 = vld [vmem:[%s2947_s4 + $0x38] sm:$0xff]  ;;  %v2094_v7 = vpop.f32.mrb[2].mxu0 }
 0x1ae   : > { %1246 = vrot.lane.b32.xlu0 %v2756_v42, %s2402_s22  ;;  %1255 = vrot.lane.b32.xlu1 %v2756_v42, %s2403_s23 }
 0x1b2   : > { %1414 = vrot.lane.b32.xlu0 %v2756_v42, %s2404_s24  ;;  %1257 = vrot.lane.b32.xlu1 %v2762_v2, %s2403_s23  ;;  %s2956_s23 = smov 111  }
 0x1b6   : > { %1500 = vrot.lane.b32.xlu0 %v2756_v42, %s2405_s25  ;;  %1248 = vrot.lane.b32.xlu1 %v2762_v2, %s2402_s22  ;;  %s2252_s22 = sshll.u32 %s2478_s9, 8  ;;  %s2411_s9 = smov [#allocation2]  }
 0x1b7   : > { %s2901_s17 = scalar_lea.hbm %s2951_s8, %s2252_s22  ;;  %s2341_s18 = sshll.u32 %s2411_s9, 4  ;;  %s2342_s18 = int_to_ptr.vmem [resolvable:$false] %s2341_s18 }
 0x1b8   : > { %s2343_s19 = scalar_lea.vmem %s2342_s18, 512 }
 0x1ba   : > { %1664 = vrot.lane.b32.xlu0 %v2756_v42, %s2406_s26  ;;  %1416 = vrot.lane.b32.xlu1 %v2762_v2, %s2404_s24 }
 0x1be   : > { %1750 = vrot.lane.b32.xlu0 %v2756_v42, %s2407_s10  ;;  %1502 = vrot.lane.b32.xlu1 %v2762_v2, %s2405_s25 }
 0x1c2   : > { %1836 = vrot.lane.b32.xlu0 %v2756_v42, %s2408_s12  ;;  %1666 = vrot.lane.b32.xlu1 %v2762_v2, %s2406_s26 }
 0x1c6   : > { %1922 = vrot.lane.b32.xlu0 %v2756_v42, %s2956_s23  ;;  %1752 = vrot.lane.b32.xlu1 %v2762_v2, %s2407_s10  ;;  %s2104_s10 = scalar_lea.sflag [#allocation3], %s296_s21 }
 0x1ca   : > { %2011 = vperm.xlu0 %2334, %v2008_v1   ;;  %1838 = vrot.lane.b32.xlu1 %v2762_v2, %s2408_s12 }
 0x1ce   : > { %1924 = vrot.lane.b32.xlu1 %v2762_v2, %s2956_s23  ;;  %s2181_s23 = sshll.u32 %s296_s21, 4 }
 0x1cf   : > { %s298_s24 = scalar_lea.vmem [#allocation2], %s2181_s23 }
 0x1d0   : > { %s2118_s25 = sshll.u32 %s298_s24, 4  ;;  %s2903_s25 = int_to_ptr.vmem [resolvable:$true] %s2118_s25 }
 0x1d1   : > { %s2337_s12 = scalar_lea.vmem %s2903_s25, 256  ;;  %p2344_p0 = scmp.lt.s32.totalorder %s2903_s25, %s2342_s18 }
 0x1d2   : > { %2022 = vperm.xlu1 %2335, %v2019_v46   ;;  %p2338_p11 = scmp.ne.s32.totalorder %s2903_s25, %s2337_s12  ;;  %p2345_p1 = scmp.lt.s32.totalorder %s2343_s19, %s2337_s12 }
 0x1d4   : > { %p2339_p12 = pnand %p2338_p11, %p2495_p5  ;;  %p2346_p2 = por %p2345_p1, %p2344_p0 }
 0x1d6   : > { %p2340_p13 = pneg %p2339_p12 }
 0x1d8   : > { %p2347_p3 = pnand %p2346_p2, %p2340_p13 }
 0x220   : > { %v1256_v47 = vpop.permute.xlu1 %1255  ;;  %v1247_v48 = vpop.permute.xlu0 %1246 }
 0x224   : > { %v1258_v49 = vpop.permute.xlu1 %1257  ;;  %v1415_v60 = vpop.permute.xlu0 %1414 }
 0x225   : > { %v1260_v50 = vsel %vm336_vm1, %v1258_v49, %v1256_v47  ;;  %v1259_v51 = vsel %vm336_vm1, %v1256_v47, %v1258_v49 }
 0x226   : > { %v1262_v53 = vmul.f32 %v1259_v51, %v2574_v16  ;;  %v1261_v54 = vmul.f32 %v1260_v50, %v2571_v15 }
 0x228   : > { %1269 = vmatprep.subr.mxu1 %v1262_v53  ;;  %v1249_v56 = vpop.permute.xlu1 %1248 }
 0x229   : > { %v1250_v57 = vsel %vm314_vm0, %v1247_v48, %v1249_v56  ;;  %v1251_v58 = vsel %vm314_vm0, %v1249_v56, %v1247_v48  ;;  %1270 = vmatpush1.msra.mxu1 %v1261_v54 }
 0x22a   : > { %v1252_v62 = vmul.f32 %v1251_v58, %v2577_v17  ;;  %v1253_v16 = vmul.f32 %v1250_v57, %v2567_v14  ;;  %2227 = vmatmul.mubr.msk.f32.vlgmr.msra.gmra.mrb[0].mxu1 %vm1265_vm10, %v2226_v55  ;;  %v1254_v17 = vld [vmem:[%s2947_s4] sm:$0xff]  ;;  %v1501_v14 = vpop.permute.xlu0 %1500 }
 0x22b   : > { %1407 = vmatprep.mubr.f32.mxu1 %v2401_v0 }
 0x22c   : > { %1343 = vmatprep.subr.mxu1 %v1253_v16  ;;  %v1417_v15 = vpop.permute.xlu1 %1416 }
 0x22d   : > { %v1418_v63 = vsel %vm522_vm3, %v1415_v60, %v1417_v15  ;;  %1344 = vmatpush1.msra.mxu1 %v1252_v62  ;;  %v1419_v3 = vsel %vm522_vm3, %v1417_v15, %v1415_v60 }
 0x22e   : > { %v1421_v4 = vmul.f32 %v1418_v63, %v2595_v28  ;;  %v1420_v6 = vmul.f32 %v1419_v3, %v2614_v36  ;;  %v1665_v19 = vpop.permute.xlu0 %1664 }
 0x230   : > { %1427 = vmatprep.subr.mxu1 %v1421_v4  ;;  %v1503_v5 = vpop.permute.xlu1 %1502 }
 0x231   : > { %v1504_v10 = vsel %vm628_vm5, %v1501_v14, %v1503_v5  ;;  %v1505_v28 = vsel %vm628_vm5, %v1503_v5, %v1501_v14 }
 0x232   : > { %v1507_v12 = vmul.f32 %v1504_v10, %v2621_v39  ;;  %2228 = vmatmul.mubr.msk.f32.vlgmr.msra.gmra.mrb[0].mxu1 %vm1265_vm10, %v1254_v17  ;;  %v1506_v36 = vmul.f32 %v1505_v28, %v2633_v45  ;;  %v1751_v23 = vpop.permute.xlu0 %1750 }
 0x233   : > { %1428 = vmatpush1.msra.mxu1 %v1420_v6  ;;  %1491 = vmatprep.mubr.f32.mxu1 %v2401_v0 }
 0x234   : > { %1513 = vmatprep.subr.mxu1 %v1507_v12  ;;  %v1667_v39 = vpop.permute.xlu1 %1666 }
 0x235   : > { %v1669_v20 = vsel %vm816_vm6, %v1667_v39, %v1665_v19  ;;  %v1668_v24 = vsel %vm816_vm6, %v1665_v19, %v1667_v39 }
 0x236   : > { %v1671_v22 = vmul.f32 %v1669_v20, %v2653_v52  ;;  %v1670_v52 = vmul.f32 %v1668_v24, %v2669_v59  ;;  %v1837_v32 = vpop.permute.xlu0 %1836  ;;  %v2235_v59 = vld [vmem:[%s2947_s4 + $0x28] sm:$0xff] }
 0x238   : > { %v1753_v45 = vpop.permute.xlu1 %1752 }
 0x239   : > { %v1755_v26 = vsel %vm922_vm7, %v1753_v45, %v1751_v23  ;;  %v1754_v9 = vsel %vm922_vm7, %v1751_v23, %v1753_v45 }
 0x23a   : > { %2230 = vmatmul.mubr.msk.f32.vlgmr.msra.gmra.mrb[0].mxu1 %vm1265_vm10, %v2229_v18  ;;  %v1757_v30 = vmul.f32 %v1755_v26, %v2676_v61  ;;  %v1756_v61 = vmul.f32 %v1754_v9, %v2692_v11  ;;  %v1923_v37 = vpop.permute.xlu0 %1922  ;;  %v2237_v11 = vld [vmem:[%s2947_s4 + $0x30] sm:$0xff] }
 0x23b   : > { %1514 = vmatpush1.msra.mxu1 %v1506_v36  ;;  %1577 = vmatprep.mubr.f32.mxu1 %v2401_v0 }
 0x23c   : > { %1591 = vmatprep.subr.mxu1 %v2762_v2  ;;  %v1839_v31 = vpop.permute.xlu1 %1838 }
 0x23d   : > { %v1841_v34 = vsel %vm1028_vm8, %v1839_v31, %v1837_v32  ;;  %v1840_v38 = vsel %vm1028_vm8, %v1837_v32, %v1839_v31 }
 0x23e   : > { %v1843_v35 = vmul.f32 %v1841_v34, %v2699_v13  ;;  %v1842_v13 = vmul.f32 %v1840_v38, %v2715_v25  ;;  %v2241_v25 = vld [vmem:[%s2947_s4 + $0x40] sm:$0xff] }
 0x240   : > { %v1925_v8 = vpop.permute.xlu1 %1924 }
 0x241   : > { %v1927_v40 = vsel %vm1134_vm9, %v1925_v8, %v1923_v37 }
 0x242   : > { %2232 = vmatmul.mubr.msk.f32.vlgmr.msra.gmra.mrb[0].mxu1 %vm1265_vm10, %v2231_v21  ;;  %v1929_v41 = vmul.f32 %v1927_v40, %v2722_v27  ;;  %v2096_v27 = vpop.f32.mrb[3].mxu0 }
 0x243   : > { %1592 = vmatpush1.msra.mxu1 %v2756_v42  ;;  %1655 = vmatprep.mubr.f32.mxu1 %v2401_v0  ;;  %v1926_v42 = vsel %vm1134_vm9, %v1923_v37, %v1925_v8 }
 0x244   : > { %1677 = vmatprep.subr.mxu1 %v1671_v22  ;;  %v1928_v2 = vmul.f32 %v1926_v42, %v2734_v33 }
 0x249   : > { %v2012_v44 = vpop.permute.xlu0 %2011 }
 0x24a   : > { %2234 = vmatmul.mubr.msk.f32.vlgmr.msra.gmra.mrb[0].mxu1 %vm1265_vm10, %v2233_v29 }
 0x24b   : > { %1678 = vmatpush1.msra.mxu1 %v1670_v52  ;;  %1741 = vmatprep.mubr.f32.mxu1 %v2401_v0 }
 0x24c   : > { %1763 = vmatprep.subr.mxu1 %v1757_v30 }
 0x251   : > { %v2023_v1 = vpop.permute.xlu1 %2022 }
 0x252   : > { %2236 = vmatmul.mubr.msk.f32.vlgmr.msra.gmra.mrb[0].mxu1 %vm1265_vm10, %v2235_v59  ;;  %v2095_v48 = vadd.f32 %v2094_v7, %v2023_v1 }
 0x253   : > { %1764 = vmatpush1.msra.mxu1 %v1756_v61  ;;  %1827 = vmatprep.mubr.f32.mxu1 %v2401_v0 }
 0x254   : > { %1849 = vmatprep.subr.mxu1 %v1843_v35 }
 0x25a   : > { %2238 = vmatmul.mubr.msk.f32.vlgmr.msra.gmra.mrb[0].mxu1 %vm1265_vm10, %v2237_v11 }
 0x25b   : > { %1850 = vmatpush1.msra.mxu1 %v1842_v13  ;;  %1913 = vmatprep.mubr.f32.mxu1 %v2401_v0 }
 0x25c   : > { %1935 = vmatprep.subr.mxu1 %v1929_v41 }
 0x262   : > { %2240 = vmatmul.mubr.msk.f32.vlgmr.msra.gmra.mrb[0].mxu1 %vm1265_vm10, %v2239_v43 }
 0x263   : > { %1936 = vmatpush1.msra.mxu1 %v1928_v2  ;;  %1999 = vmatprep.mubr.f32.mxu1 %v2401_v0  ;;  %v2097_v0 = vadd.f32 %v2096_v27, %v2023_v1 }
 0x26a   : > { %2242 = vmatmul.mubr.msk.f32.vlgmr.msra.gmra.mrb[0].mxu1 %vm1265_vm10, %v2241_v25 }
 0x33d   : > { %v2001_v46 = vpop.f32.mrb[0].mxu1 }
 0x33e   : > { %v2014_v33 = vadd.f32 %v2012_v44, %v2001_v46  ;;  %v2003_v47 = vpop.f32.mrb[1].mxu1 }
 0x33f   : > { %v2015_v49 = vadd.f32 %v2012_v44, %v2003_v47 }
 0x340   : > { %v2016_v50 = vmax.f32 %v2014_v33, 0.0 }
 0x341   : > { %v2017_v51 = vmax.f32 %v2015_v49, 0.0 }
 0x342   : > { %v2099_v53 = vadd.f32 %v2095_v48, %v2016_v50 }
 0x343   : > { %v2100_v54 = vadd.f32 %v2097_v0, %v2017_v51 }
 0x344   : > { %2101 = vst [vmem:[%s298_s24] sm:$0xff] %v2099_v53 }
 0x345   : > { %2102 = vst [vmem:[%s298_s24 + $0x8] sm:$0xff] %v2100_v54 }
 0x346   : > { %2350 = shalt.err (!%p2347_p3)
}
 0x347   : > { %s2351_s20 = scalar_lea.hbm %s2901_s17, 256  ;;  %s2355_s22 = scalar_lea.hbm %s2951_s8, 512 }
 0x348   : > { %p2352_p4 = scmp.ne.s32.totalorder %s2901_s17, %s2351_s20  ;;  %p2356_p9 = scmp.lt.u32.totalorder %s2901_s17, %s2951_s8 }
 0x349   : > { %p2357_p10 = scmp.lt.u32.totalorder %s2355_s22, %s2351_s20  ;;  %p2359_p12 = scmp.lt.u32.totalorder %s2351_s20, %s2901_s17 }
 0x34a   : > { %p2353_p7 = pnand %p2352_p4, %p2495_p5 }
 0x34b   : > { %p2358_p11 = por %p2357_p10, %p2356_p9 }
 0x34c   : > { %p2354_p8 = pneg %p2353_p7 }
 0x34d   : > { %p2360_p13 = por %p2359_p12, %p2358_p11 }
 0x34f   : > { %p2361_p0 = pnand %p2360_p13, %p2354_p8 }
 0x351   : > { %2364 = shalt.err (!%p2361_p0)
}
 0x352   : > { %2285 = dma.vmem_to_hbm [thread:$0]  (%p2495_p5), %s2903_s25, 256, %s2901_s17, %s2104_s10  }
 0x353 PF: > { %p2291_p1 = scmp.ge.s32.totalorder %s2399_s30, 2  ;;  %s2130_s26 = sand.u32 1, %s2387_s27  }
 0x354   : > { %s2131_s12 = scalar_lea.sflag [#allocation3], %s2130_s26 }
 0x355   : > { %p2288_p2 = pnand %p2291_p1, %p2499_p6 }
 0x357   : > { %2382 = dma.done.wait (!%p2288_p2), %s2131_s12, 256  }
 0x358   : > { %2384 = vsyncadd (!%p2288_p2), %s2131_s12, 4294967040  ;;  %p18_p3 = scmp.ge.s32.totalorder %s2482_s11, 4   ;;  %s2957_s27 = smov %s2391_s28 }
 0x359   : > { %s2958_s28 = smov %s2395_s29  ;;  %s2959_s29 = smov %s2493_s14 }
 0x35a   : > { %s2960_s30 = smov %s2482_s11  ;;  %20 = sbr.rel (!%p18_p3) target bundleno = 3 (0x3), region = 110 }
 0x361   :  { %2136 = vsyncpa [#allocation3], 1 }
 0x362   :  { %2138 = vsyncpa [#allocation3 + $0x1], 1 }

</bundles_post_ra>
